<compile_context>
chip_gen: v7x
topology: tpu7x:2x2x1
jax: 0.10.0
libtpu: 0.0.40
codegen_flags: <defaults>
</compile_context>

<pallas_src>
import jax
import jax.numpy as jnp
from jax import lax
from jax.experimental import pallas as pl
from jax.experimental.pallas import tpu as pltpu

N_OUT = 9  # net1 output width (3x3 transform, flattened)


def net_kernel(x_ref, w_ref, b_ref, o_ref):
    x = x_ref[...]                                   # [TB, D]  f32
    w = w_ref[...]                                   # [D, 9]   f32
    b = b_ref[...]                                   # [1, 9]   bias + (+1 at 0,4,8)

    # Squared L2 norm along features; rsqrt on the EUP, multiply not divide.
    sumsq = jnp.sum(x * x, axis=1, keepdims=True)    # [TB, 1]
    inv_r = lax.rsqrt(sumsq)                         # [TB, 1] (inf on zero rows, see where)

    # y = x @ W + (b + identity_offset), f32 accumulation on the MXU.
    y = jnp.dot(x, w, preferred_element_type=jnp.float32) + b   # [TB, 9]
    y = y * inv_r

    # Identity row [1,0,0,0,1,0,0,0,1] built in-kernel (columns where col % 4 == 0).
    col = lax.broadcasted_iota(jnp.int32, (1, N_OUT), 1)
    ident = jnp.where(col % 4 == 0, 1.0, 0.0).astype(jnp.float32)  # [1, 9]

    # Rows with (near-)zero norm -> identity row.  (r < 1e-5  <=>  sumsq < 1e-10)
    # Keep this where AFTER the multiply: it also discards the inf/NaN branch.
    o_ref[...] = jnp.where(sumsq < 1e-10, ident, y)


def prepare_net_params(w, b):
    """Hoisted, call once: fold the '+1 at columns 0/4/8' into the bias."""
    ident = jnp.zeros((N_OUT,), jnp.float32).at[jnp.array([0, 4, 8])].set(1.0)
    w_f32 = w.astype(jnp.float32)
    bias_eff = (b.astype(jnp.float32) + ident).reshape(1, N_OUT)
    return w_f32, bias_eff


def _choose_tile_b(B, D, *, vmem_budget_bytes=16 << 20, max_tb=32768, min_steps=2):
    """Batch tile: multiple of 8, VMEM-aware, >= min_steps grid steps when B allows."""
    # Double-buffered x tile + double-buffered (TB, 9) output tile, f32.
    bytes_per_row = 2 * (D * 4) + 2 * (N_OUT * 4)
    tb = min(max_tb, max(8, vmem_budget_bytes // bytes_per_row))
    if B > 8 * min_steps:
        # Keep at least `min_steps` steps so v7x megacore gets both TensorCores.
        tb = min(tb, pl.cdiv(B, min_steps))
    tb = min(tb, ((B + 7) // 8) * 8)      # never larger than the padded batch
    tb = max(8, (tb // 8) * 8)            # sublane-aligned
    return tb


def net_forward(x, w_f32, bias_eff):
    """x: [B, D] f32, w_f32: [D, 9] f32, bias_eff: [1, 9] f32 -> [B, 9] f32."""
    B, D = x.shape
    x_f32 = x.astype(jnp.float32)

    TB = _choose_tile_b(B, D)
    grid = (pl.cdiv(B, TB),)              # ragged last block: OOB writes are masked

    return pl.pallas_call(
        net_kernel,
        out_shape=jax.ShapeDtypeStruct((B, N_OUT), jnp.float32),
        grid=grid,
        in_specs=[
            pl.BlockSpec((TB, D), lambda i: (i, 0)),        # x: streamed per tile
            pl.BlockSpec((D, N_OUT), lambda i: (0, 0)),     # w: VMEM-resident
            pl.BlockSpec((1, N_OUT), lambda i: (0, 0)),     # bias(+ident): VMEM-resident
        ],
        out_specs=pl.BlockSpec((TB, N_OUT), lambda i: (i, 0)),
        compiler_params=pltpu.CompilerParams(
            dimension_semantics=("parallel",),              # megacore sharding on v7x
            vmem_limit_bytes=32 << 20,                      # > v5e 16MiB default, < v7x 64MiB
        ),
    )(x_f32, w_f32, bias_eff)


def net_forward_ref(x, w, b):
    """Pure-JAX reference implementing the PyTorch forward exactly."""
    r = jnp.sqrt(jnp.sum(x * x, axis=1, keepdims=True))
    y = x @ w + b[None, :]
    ident = jnp.array([1., 0., 0., 0., 1., 0., 0., 0., 1.], jnp.float32)
    y = y + ident[None, :]
    y = y / r
    y = jnp.where(r < 1e-5, ident[None, :], y)
    return y


if __name__ == "__main__":
    B, D = 8, 32
    key = jax.random.PRNGKey(0)
    kx, kw, kb = jax.random.split(key, 3)

    x = jax.random.normal(kx, (B, D), dtype=jnp.float32)
    # Make one row (near-)zero to exercise the r < 1e-5 identity-fallback path.
    x = x.at[3, :].set(0.0)

    # Deterministic synthetic parameters for net1 = Linear(D, 9).
    w = jax.random.normal(kw, (D, 9), dtype=jnp.float32) * 0.1
    b = jax.random.normal(kb, (9,), dtype=jnp.float32) * 0.1

    w_f32, bias_eff = prepare_net_params(w, b)   # hoisted one-time prep
    y = net_forward(x, w_f32, bias_eff)
    y = jax.block_until_ready(y)

    y_ref = net_forward_ref(x, w, b)
    assert y.shape == (B, 9)
    assert jnp.allclose(y, y_ref, atol=1e-5, rtol=1e-5)

    print("KERNEL_OK")
</pallas_src>

<mosaic_0001>
module attributes {stable_mosaic.version = 11 : i64} {
  func.func @net_kernel(%arg0: i32, %arg1: memref<8x32xf32, #tpu.memory_space<vmem>>, %arg2: memref<32x9xf32, #tpu.memory_space<vmem>>, %arg3: memref<1x9xf32, #tpu.memory_space<vmem>>, %arg4: memref<8x9xf32, #tpu.memory_space<vmem>>) attributes {dimension_semantics = [#tpu.dimension_semantics<parallel>], iteration_bounds = array<i64: 1>, scalar_prefetch = 0 : i64, scratch_operands = 0 : i64, tpu.core_type = #tpu.core_type<tc>, window_params = [{transform_indices = @transform_0, window_bounds = array<i64: 8, 32>}, {pipeline_mode = #tpu.pipeline_mode<synchronous>, transform_indices = @transform_1, window_bounds = array<i64: 32, 9>}, {pipeline_mode = #tpu.pipeline_mode<synchronous>, transform_indices = @transform_2, window_bounds = array<i64: 1, 9>}, {transform_indices = @transform_3, window_bounds = array<i64: 8, 9>}]} {
    %c0 = arith.constant 0 : index
    %c0_0 = arith.constant 0 : index
    %0 = vector.load %arg1[%c0, %c0_0] : memref<8x32xf32, #tpu.memory_space<vmem>>, vector<8x32xf32>
    %c0_1 = arith.constant 0 : index
    %c0_2 = arith.constant 0 : index
    %1 = vector.load %arg2[%c0_1, %c0_2] : memref<32x9xf32, #tpu.memory_space<vmem>>, vector<32x9xf32>
    %c0_3 = arith.constant 0 : index
    %c0_4 = arith.constant 0 : index
    %2 = vector.load %arg3[%c0_3, %c0_4] : memref<1x9xf32, #tpu.memory_space<vmem>>, vector<1x9xf32>
    %3 = arith.mulf %0, %0 : vector<8x32xf32>
    %cst = arith.constant dense<0.000000e+00> : vector<8xf32>
    %4 = vector.multi_reduction <add>, %3, %cst [1] : vector<8x32xf32> to vector<8xf32>
    %5 = vector.shape_cast %4 : vector<8xf32> to vector<8x1xf32>
    %6 = math.rsqrt %5 : vector<8x1xf32>
    %cst_5 = arith.constant dense<0.000000e+00> : vector<8x9xf32>
    %7 = tpu.matmul %0, %1, %cst_5 {dimension_numbers = #tpu.dot_dimension_numbers<[1], [0], [0], [1], [0, 0, 1, 1], [], []>} : vector<8x32xf32>, vector<32x9xf32>, vector<8x9xf32> -> vector<8x9xf32>
    %8 = vector.broadcast %2 : vector<1x9xf32> to vector<8x9xf32>
    %9 = arith.addf %7, %8 : vector<8x9xf32>
    %10 = vector.broadcast %6 : vector<8x1xf32> to vector<8x9xf32>
    %11 = arith.mulf %9, %10 : vector<8x9xf32>
    %12 = tpu.iota {dimensions = array<i32: 1>} : vector<1x9xi32>
    %c4_i32 = arith.constant 4 : i32
    %c0_i32 = arith.constant 0 : i32
    %13 = arith.cmpi eq, %c4_i32, %c0_i32 : i32
    %c1_i32 = arith.constant 1 : i32
    %14 = arith.select %13, %c1_i32, %c4_i32 : i32
    %15 = vector.broadcast %14 : i32 to vector<1x9xi32>
    %16 = arith.remsi %12, %15 : vector<1x9xi32>
    %c0_i32_6 = arith.constant 0 : i32
    %17 = vector.broadcast %c0_i32_6 : i32 to vector<1x9xi32>
    %18 = arith.cmpi ne, %16, %17 : vector<1x9xi32>
    %c0_i32_7 = arith.constant 0 : i32
    %19 = vector.broadcast %c0_i32_7 : i32 to vector<1x9xi32>
    %20 = arith.cmpi slt, %16, %19 : vector<1x9xi32>
    %c0_i32_8 = arith.constant 0 : i32
    %21 = arith.cmpi slt, %14, %c0_i32_8 : i32
    %22 = vector.broadcast %21 : i1 to vector<1x9xi1>
    %23 = vector.broadcast %22 : vector<1x9xi1> to vector<1x9xi1>
    %24 = arith.xori %20, %23 : vector<1x9xi1>
    %25 = arith.andi %24, %18 : vector<1x9xi1>
    %26 = vector.broadcast %14 : i32 to vector<1x9xi32>
    %27 = arith.addi %16, %26 : vector<1x9xi32>
    %28 = arith.select %25, %27, %16 : vector<1x9xi1>, vector<1x9xi32>
    %c0_i32_9 = arith.constant 0 : i32
    %29 = vector.broadcast %c0_i32_9 : i32 to vector<1x9xi32>
    %30 = arith.cmpi eq, %28, %29 : vector<1x9xi32>
    %cst_10 = arith.constant 1.000000e+00 : f32
    %cst_11 = arith.constant 0.000000e+00 : f32
    %31 = vector.broadcast %cst_10 : f32 to vector<1x9xf32>
    %32 = vector.broadcast %cst_11 : f32 to vector<1x9xf32>
    %33 = arith.select %30, %31, %32 : vector<1x9xi1>, vector<1x9xf32>
    %cst_12 = arith.constant 1.000000e-10 : f32
    %34 = vector.broadcast %cst_12 : f32 to vector<8x1xf32>
    %35 = arith.cmpf olt, %5, %34 : vector<8x1xf32>
    %36 = vector.shape_cast %35 : vector<8x1xi1> to vector<8x1xi1>
    %37 = vector.broadcast %36 : vector<8x1xi1> to vector<8x9xi1>
    %38 = vector.shape_cast %33 : vector<1x9xf32> to vector<1x9xf32>
    %39 = vector.broadcast %38 : vector<1x9xf32> to vector<8x9xf32>
    %40 = arith.select %37, %39, %11 : vector<8x9xi1>, vector<8x9xf32>
    %c0_13 = arith.constant 0 : index
    %c0_14 = arith.constant 0 : index
    %41 = vector.load %arg4[%c0_13, %c0_14] : memref<8x9xf32, #tpu.memory_space<vmem>>, vector<8x9xf32>
    tpu.vector_store %arg4[%c0_13, %c0_14], %40 {strides = array<i32>} : memref<8x9xf32, #tpu.memory_space<vmem>>, vector<8x9xf32>,
    return
  }
  func.func @transform_0(%arg0: i32) -> (i32, i32) {
    %c0_i32 = arith.constant 0 : i32
    %c0_i32_0 = arith.constant 0 : i32
    return %arg0, %c0_i32 : i32, i32
  }
  func.func @transform_1(%arg0: i32) -> (i32, i32) {
    %c0_i32 = arith.constant 0 : i32
    %c0_i32_0 = arith.constant 0 : i32
    %c0_i32_1 = arith.constant 0 : i32
    return %c0_i32, %c0_i32_0 : i32, i32
  }
  func.func @transform_2(%arg0: i32) -> (i32, i32) {
    %c0_i32 = arith.constant 0 : i32
    %c0_i32_0 = arith.constant 0 : i32
    %c0_i32_1 = arith.constant 0 : i32
    return %c0_i32, %c0_i32_0 : i32, i32
  }
  func.func @transform_3(%arg0: i32) -> (i32, i32) {
    %c0_i32 = arith.constant 0 : i32
    %c0_i32_0 = arith.constant 0 : i32
    return %arg0, %c0_i32 : i32, i32
  }
}

</mosaic_0001>

<bundles_post_ra>
// kernel: tpu_custom_call.1
= control target key start
LH: loop header
LB: loop body
LE: loop exit
PB: predicated region body
PF: predicated region fallthrough
CT: control target
= control target key end

     0   :  { %v197_v3 = vmov 0.0|0.0   ;;  %vm198_vm0 = vmmov 0   ;;  %v199_v6 = vmov 0.0   ;;  %s251_s0 = inlined_call_operand.vmem [shape: f32[8,32], index: 0, kind: input, shape index: {}]   ;;  %s252_s1 = inlined_call_operand.vmem [shape: f32[32,9], index: 1, kind: input, shape index: {}]   ;;  %s253_s2 = inlined_call_operand.vmem [shape: f32[1,9], index: 2, kind: input, shape index: {}]   ;;  %s254_s3 = inlined_call_operand.hbm [shape: f32[8,9], index: 3, kind: output, shape index: {}]  }
   0x1   :  { %v16_v0 = vld [vmem:[%s252_s1] sm:$0xff]  ;;  %v17_v1 = vld [vmem:[%s252_s1 + $0x8] sm:$0xff]  ;;  %v18_v2 = vld [vmem:[%s252_s1 + $0x10] sm:$0xff]  ;;  %161 = vmatprep.subr.bf16.mxu0 %v197_v3  ;;  %158 = vmatprep.mubr.msk.f32.mxu0 %vm198_vm0, %v199_v6 }
   0x2   :  { %v162_v4 = vpack.c.bf16 %v17_v1, %v16_v0  ;;  %v19_v5 = vld [vmem:[%s252_s1 + $0x18] sm:$0xff]  ;;  %v15_v7 = vld [vmem:[%s251_s0] sm:$0xff] }
   0x3   :  { %8 = vsyncpa [#allocation3], 0  ;;  %v21_v8 = vmul.f32 %v15_v7, %v15_v7  ;;  %v165_v9 = vpack.c.bf16 %v19_v5, %v18_v2  ;;  %vm22_vm1 = vcmask 261120   ;;  %v107_v11 = vlaneseq  ;;  %v143_v15 = vld [vmem:[%s253_s2] ss:$0 sm:$0xff]  ;;  %s200_s0 = smov [#allocation2]  }
   0x4   :  { %163 = vmatpush3.bf16.msra.mxu0 %v162_v4  ;;  %s135_s23 = sshll.u32 %s200_s0, 4  ;;  %vm127_vm3 = vcmask 72704   ;;  %s136_s23 = int_to_ptr.vmem [resolvable:$true] %s135_s23 }
   0x5   :  { %164 = vmatprep.subr.bf16.mxu0 %v197_v3  ;;  %v23_v10 = vsel %vm22_vm1, %v21_v8, 0.0  ;;  %v108_v13 = vand.u32 127, %v107_v11  ;;  %s173_s24 = scalar_lea.vmem %s136_s23, 128  ;;  %p178_p1 = scmp.lt.s32.totalorder %s136_s23, %s136_s23 }
   0x6   :  { %24 = vadd.xlane.f32.xlu0 %v23_v10  ;;  %p174_p0 = scmp.ne.s32.totalorder %s136_s23, %s173_s24  ;;  %p179_p2 = scmp.lt.s32.totalorder %s173_s24, %s173_s24 }
   0x7   :  { %v113_v14 = vand.u32 3, %v108_v13 }
   0x8   :  { %166 = vmatpush3.bf16.msra.mxu0 %v165_v9  ;;  %p180_p3 = por %p179_p2, %p178_p1 }
   0x9   :  { %vm121_vm2 = vcmp.eq.s32.totalorder %v113_v14, 0 }
   0xa   :  { %v122_v20 = vsel %vm121_vm2, 1.0, %v199_v6  ;;  %p181_p4 = pnand %p180_p3, %p174_p0 }
   0xb   :  { %159 = vmatmul.mubr.msk.f32.vlgmr.msra.gmra.mrb[0].mxu0 %vm22_vm1, %v15_v7 }
  0x93   :  { %v25_v12 = vpop.xlane.xlu0 %24 }
  0x94   :  { %171 = vrsqrt.f32 %v25_v12  ;;  %vm123_vm4 = vcmp.lt.f32.partialorder %v25_v12, 1e-10 }
  0x9e   :  { %v172_v16 = vpop.eup %171 }
  0xde   :  { %v102_v17 = vpop.f32.mrb[0].mxu0 }
  0xdf   :  { %v103_v18 = vadd.f32 %v143_v15, %v102_v17  ;;  %v160_v19 = vpop.f32.mrb[1].mxu0 }
  0xe1   :  { %v106_v21 = vmul.f32 %v172_v16, %v103_v18 }
  0xe3   :  { %v126_v22 = vsel %vm123_vm4, %v122_v20, %v106_v21 }
  0xe4   :  { %128 = vst.msk [vmem:[#allocation2] sm:$0xff] %vm127_vm3, %v126_v22 }
  0xe5   :  { %184 = shalt.err (!%p181_p4)
}
  0xe6   :  { %s185_s26 = scalar_lea.hbm %s254_s3, 128 }
  0xe7   :  { %p186_p5 = scmp.ne.s32.totalorder %s254_s3, %s185_s26  ;;  %p189_p6 = scmp.lt.u32.totalorder %s185_s26, %s254_s3 }
  0xe9   :  { %p191_p7 = pnand %p189_p6, %p186_p5 }
  0xeb   :  { %194 = shalt.err (!%p191_p7)
}
  0xec   :  { %138 = dma.vmem_to_hbm [thread:$0]  %s136_s23, 128, %s254_s3, [#allocation3]  }
  0xed   :  { %195 = dma.done.wait [#allocation3], 128  }
  0xee   :  { %196 = vsyncadd [#allocation3], 4294967168 }
  0xef   :  { %142 = vsyncpa [#allocation3], 1 }

</bundles_post_ra>
